<compile_context>
chip_gen: v6e
topology: v6e:2x2x1
jax: 0.10.0
libtpu: 0.0.40
codegen_flags: <defaults>
</compile_context>

<pallas_src>
import functools

import jax
import jax.numpy as jnp
from jax import lax
from jax.experimental import pallas as pl
from jax.experimental.pallas import tpu as pltpu


def _input_proj_kernel(x_ref, lmask_ref, rmask_ref, w_ref, b_ref, o_ref, *,
                       W, TS, S, n_h, neg_slope, compute_dtype):
    # x_ref    : (1, Cin, S)        full flattened image of one batch element (VMEM-resident)
    # lmask_ref: (1, TS)            1.0 where col != 0      (left-edge zero padding)
    # rmask_ref: (1, TS)            1.0 where col != W - 1  (right-edge zero padding)
    # w_ref    : (3, Cout, 3*Cin)   conv taps, indexed by kx; columns ordered (ky, cin)
    # b_ref    : (Cout, 1)          bias (f32)
    # o_ref    : (1, Cout, TS)      output rows [h*TH, (h+1)*TH), flattened
    cin = x_ref.shape[1]
    cdt = compute_dtype
    h = pl.program_id(1)

    if n_h == 1:
        # Single row-tile: the whole image is the tile; the vertical halo is all zero pad.
        xc = x_ref[0].astype(cdt)                                       # (Cin, TS) == (Cin, S)
        top = jnp.zeros((cin, W), cdt)
        bot = jnp.zeros((cin, W), cdt)
    else:
        # TS % 128 == 0 is guaranteed by the wrapper whenever n_h > 1, so every dynamic
        # start below is lane-aligned.
        s0 = pl.multiple_of(h * TS, 128)
        xc = x_ref[0, :, pl.ds(s0, TS)].astype(cdt)                     # (Cin, TS) centre rows

        # One-row halos above / below the tile — load ~W lanes, not whole neighbour tiles.
        if W % 128 == 0:
            t0 = pl.multiple_of(jnp.maximum(s0 - W, 0), 128)
            b0 = pl.multiple_of(jnp.minimum(s0 + TS, S - W), 128)
            top = x_ref[0, :, pl.ds(t0, W)].astype(cdt)
            bot = x_ref[0, :, pl.ds(b0, W)].astype(cdt)
        elif W < 128:
            # Load one aligned 128-lane chunk containing the halo row, slice the row out.
            t0 = pl.multiple_of(jnp.maximum(s0 - 128, 0), 128)
            b0 = pl.multiple_of(jnp.minimum(s0 + TS, S - 128), 128)
            top = x_ref[0, :, pl.ds(t0, 128)][:, 128 - W:].astype(cdt)
            bot = x_ref[0, :, pl.ds(b0, 128)][:, :W].astype(cdt)
        else:
            # W > 128 and not lane-aligned: fall back to whole neighbour-tile halo loads.
            t0 = pl.multiple_of(jnp.maximum(s0 - TS, 0), 128)
            b0 = pl.multiple_of(jnp.minimum(s0 + TS, S - TS), 128)
            top = x_ref[0, :, pl.ds(t0, TS)][:, TS - W:].astype(cdt)
            bot = x_ref[0, :, pl.ds(b0, TS)][:, :W].astype(cdt)
        # Clamped loads read garbage at the image borders; mask to zero (conv zero padding).
        top = jnp.where(h > 0, top, jnp.zeros_like(top))
        bot = jnp.where(h < n_h - 1, bot, jnp.zeros_like(bot))

    # Vertically shifted copies (conv rows ky = 0, 1, 2 -> source rows r-1, r, r+1).
    if TS == W:                                   # single-row tile: shifted copies are the halos
        x_up, x_dn = top, bot
    else:
        x_up = jnp.concatenate([top, xc[:, :TS - W]], axis=1)           # x[.., r-1, ..]
        x_dn = jnp.concatenate([xc[:, W:], bot], axis=1)                # x[.., r+1, ..]
    xv = jnp.concatenate([x_up, xc, x_dn], axis=0)                      # (3*Cin, TS), ky-major

    # Horizontally shifted copies: cheap XLU lane rolls; precomputed edge masks zero the
    # lanes that wrapped across an image-row boundary (conv zero padding at row edges).
    x_l = pltpu.roll(xv, shift=1, axis=1) * lmask_ref[...]              # x[.., w-1]
    x_r = pltpu.roll(xv, shift=TS - 1, axis=1) * rmask_ref[...]         # x[.., w+1]

    # Three K = 3*Cin MXU matmuls accumulated in f32 — avoids materializing a (9*Cin, TS)
    # im2col concat (its write+read was the largest per-tile VMEM temp).
    acc = jnp.dot(w_ref[1], xv, preferred_element_type=jnp.float32)     # kx = 1 (centre)
    acc += jnp.dot(w_ref[0], x_l, preferred_element_type=jnp.float32)   # kx = 0 (left tap)
    acc += jnp.dot(w_ref[2], x_r, preferred_element_type=jnp.float32)   # kx = 2 (right tap)

    acc = acc + b_ref[...]
    acc = jnp.where(acc >= 0, acc, neg_slope * acc)                     # LeakyReLU(0.01)
    o_ref[0] = acc.astype(o_ref.dtype)


def _round_up(n, m):
    return -(-n // m) * m


def _vmem_capacity_bytes():
    """Per-TensorCore VMEM capacity; conservative (v7x-sized) fallback off-TPU."""
    try:
        return int(pltpu.get_tpu_info().vmem_capacity_bytes)
    except Exception:
        return 64 * 1024 * 1024


def _choose_tile_h(H, W, cin, cout, itemsize, c_itemsize, budget_bytes):
    """Largest row-tile height TH (divisor of H; TH*W a multiple of 128 unless TH == H)
    whose VMEM footprint — including the sublane-padded, single-buffered resident input
    block — fits the per-generation budget."""
    S = H * W
    fixed = _round_up(cin, 8) * S * itemsize                 # VMEM-resident input image
    best = None
    fallback = None
    for th in range(1, H + 1):
        if H % th:
            continue
        ts = th * W
        if ts % 128 != 0 and th != H:                        # (8,128) output lane rule
            continue
        if fallback is None:
            fallback = th
        tile_bytes = (2 * cout * ts * itemsize                           # dbl-buffered out block
                      + 3 * _round_up(3 * cin, 8) * ts * c_itemsize      # xv / x_l / x_r temps
                      + 3 * _round_up(cin, 8) * ts * c_itemsize          # xc / x_up / x_dn temps
                      + 2 * cout * ts * 4)                               # f32 accumulator temps
        if fixed + tile_bytes > budget_bytes:
            continue
        best = th                                            # keep the largest TH that fits
    if best is None:
        best = fallback if fallback is not None else H
    return best


def input_proj(x_nchw, weight_oihw, bias, *, neg_slope=0.01, tile_h=None,
               compute_dtype=None, out_dtype=None):
    """Conv2d(Cin->Cout, 3x3, stride 1, pad 1) + LeakyReLU.  NCHW in / NCHW out."""
    B, Cin, H, W = x_nchw.shape
    Cout, Cin_w, KH, KW = weight_oihw.shape
    assert (Cin_w, KH, KW) == (Cin, 3, 3)
    S = H * W

    in_dtype = x_nchw.dtype
    if compute_dtype is None:
        # bf16 im2col halves the in-kernel ld/st bytes of the shifted copies and runs on the
        # bf16-native MXU on v6e/v7x; accumulation stays f32.  Pass jnp.float32 for exact conv.
        compute_dtype = jnp.bfloat16 if in_dtype == jnp.float32 else in_dtype
    if out_dtype is None:
        out_dtype = in_dtype            # on v5e, bf16 output ~halves the HBM-write roofline cost

    itemsize = jnp.dtype(in_dtype).itemsize
    c_itemsize = jnp.dtype(compute_dtype).itemsize

    # Generation-aware VMEM budgeting: ~50 MiB on v7x (64 MiB/TC), ~100 MiB on v5e/v6e (128 MiB).
    vmem_cap = int(_vmem_capacity_bytes() * 0.78)

    if tile_h is None:
        TH = _choose_tile_h(H, W, Cin, Cout, itemsize, c_itemsize,
                            budget_bytes=(vmem_cap * 3) // 4)
        # Megacore balance (v7x has 2 TCs): don't leave a core idle with a 1-step grid.
        if B * (H // TH) < 2:
            for th in range(TH - 1, 0, -1):
                if H % th == 0 and (th * W) % 128 == 0:
                    TH = th
                    break
    else:
        TH = tile_h
    assert H % TH == 0
    TS = TH * W
    n_h = H // TH
    assert TS % 128 == 0 or n_h == 1, "row tile must be lane-aligned unless it covers the image"

    # Free reshapes only — activations stay NCHW, no transpose / pad round trips through HBM.
    x_flat = x_nchw.reshape(B, Cin, S)
    # Tiny weight re-pack: (Cout, Cin, ky, kx) -> (kx, Cout, ky, cin) -> (3, Cout, 3*Cin),
    # matching the per-kx im2col operands built inside the kernel.
    w3 = jnp.transpose(weight_oihw, (3, 0, 2, 1)).reshape(KW, Cout, KH * Cin).astype(compute_dtype)
    b_mat = bias.reshape(Cout, 1).astype(jnp.float32)
    # Precomputed row-edge masks (same for every tile since TS is a multiple of W).
    col = jnp.arange(TS, dtype=jnp.int32) % W
    lmask = (col != 0).astype(compute_dtype).reshape(1, TS)
    rmask = (col != W - 1).astype(compute_dtype).reshape(1, TS)

    vmem_est = (_round_up(Cin, 8) * S * itemsize                       # resident input (1-buffered)
                + 2 * Cout * TS * jnp.dtype(out_dtype).itemsize        # output blocks (dbl-buffered)
                + 3 * _round_up(3 * Cin, 8) * TS * c_itemsize
                + 3 * _round_up(Cin, 8) * TS * c_itemsize
                + 2 * Cout * TS * 4)
    vmem_limit = int(min(vmem_cap, max(32 * 1024 * 1024, 2 * vmem_est)))

    kernel = functools.partial(_input_proj_kernel, W=W, TS=TS, S=S, n_h=n_h,
                               neg_slope=neg_slope, compute_dtype=compute_dtype)

    def _build(single_buffer):
        pm = pl.Buffered(1) if single_buffer else None

        def spec(shape, imap):
            if pm is None:
                return pl.BlockSpec(shape, imap)
            return pl.BlockSpec(shape, imap, pipeline_mode=pm)

        return pl.pallas_call(
            kernel,
            out_shape=jax.ShapeDtypeStruct((B, Cout, S), out_dtype),
            grid_spec=pltpu.PrefetchScalarGridSpec(
                num_scalar_prefetch=0,
                grid=(B, n_h),
                in_specs=[
                    # Whole flattened image per batch element: its block index depends only on
                    # b, so it is DMA'd once per batch and stays VMEM-resident across row tiles;
                    # Buffered(1) stops the pipeline from double-buffering this largest block.
                    spec((1, Cin, S), lambda b, h: (b, 0, 0)),
                    spec((1, TS), lambda b, h: (0, 0)),
                    spec((1, TS), lambda b, h: (0, 0)),
                    spec((KW, Cout, KH * Cin), lambda b, h: (0, 0, 0)),
                    spec((Cout, 1), lambda b, h: (0, 0)),
                ],
                out_specs=pl.BlockSpec((1, Cout, TS), lambda b, h: (b, 0, h)),
            ),
            compiler_params=pltpu.CompilerParams(
                dimension_semantics=("parallel", "parallel"),
                vmem_limit_bytes=vmem_limit,
            ),
        )

    try:
        out_flat = _build(True)(x_flat, lmask, rmask, w3, b_mat)
    except Exception:
        # Fallback if this jax version does not honour pipeline_mode on pallas_call inputs.
        out_flat = _build(False)(x_flat, lmask, rmask, w3, b_mat)

    return out_flat.reshape(B, Cout, H, W)


def _reference(x_nchw, weight_oihw, bias, neg_slope=0.01):
    y = lax.conv_general_dilated(
        x_nchw, weight_oihw, window_strides=(1, 1), padding=((1, 1), (1, 1)),
        dimension_numbers=("NCHW", "OIHW", "NCHW"))
    y = y + bias[None, :, None, None]
    return jnp.where(y >= 0, y, neg_slope * y)


if __name__ == "__main__":
    B, Cin, H, W, Cout = 2, 3, 16, 16, 32

    key = jax.random.PRNGKey(0)
    kx, kw, kb = jax.random.split(key, 3)
    x = jax.random.normal(kx, (B, Cin, H, W), dtype=jnp.float32)
    # Deterministic synthetic parameters (Conv2d weight (Cout, Cin, 3, 3), bias (Cout,)).
    weight = 0.1 * jax.random.normal(kw, (Cout, Cin, 3, 3), dtype=jnp.float32)
    bias = 0.1 * jax.random.normal(kb, (Cout,), dtype=jnp.float32)

    ref = _reference(x, weight, bias)

    # 1) Exact f32 im2col, explicit TH=8 -> grid (2, 2): exercises the in-kernel halo path.
    out_f32 = jax.block_until_ready(
        input_proj(x, weight, bias, tile_h=8, compute_dtype=jnp.float32))
    assert out_f32.shape == (B, Cout, H, W)
    assert jnp.allclose(out_f32, ref, atol=1e-4, rtol=1e-4), \
        float(jnp.max(jnp.abs(out_f32 - ref)))

    # 2) Default fast path: auto tile (TH=H -> grid (2, 1)), bf16 im2col + f32 accumulation.
    out = jax.block_until_ready(input_proj(x, weight, bias))
    assert out.shape == (B, Cout, H, W)
    assert jnp.allclose(out, ref, atol=2e-2, rtol=2e-2), \
        float(jnp.max(jnp.abs(out - ref)))

    print("KERNEL_OK")
</pallas_src>

<mosaic_0001>
module attributes {stable_mosaic.version = 11 : i64} {
  func.func @_input_proj_kernel(%arg0: i32, %arg1: i32, %arg2: memref<1x3x256xf32, #tpu.memory_space<vmem>>, %arg3: memref<1x128xf32, #tpu.memory_space<vmem>>, %arg4: memref<1x128xf32, #tpu.memory_space<vmem>>, %arg5: memref<3x32x9xf32, #tpu.memory_space<vmem>>, %arg6: memref<32x1xf32, #tpu.memory_space<vmem>>, %arg7: memref<1x32x128xf32, #tpu.memory_space<vmem>>) attributes {dimension_semantics = [#tpu.dimension_semantics<parallel>, #tpu.dimension_semantics<parallel>], iteration_bounds = array<i64: 2, 2>, scalar_prefetch = 0 : i64, scratch_operands = 0 : i64, tpu.core_type = #tpu.core_type<tc>, window_params = [{pipeline_mode = #tpu.pipeline_mode<synchronous>, transform_indices = @transform_0, window_bounds = array<i64: 1, 3, 256>}, {pipeline_mode = #tpu.pipeline_mode<synchronous>, transform_indices = @transform_1, window_bounds = array<i64: 1, 128>}, {pipeline_mode = #tpu.pipeline_mode<synchronous>, transform_indices = @transform_2, window_bounds = array<i64: 1, 128>}, {pipeline_mode = #tpu.pipeline_mode<synchronous>, transform_indices = @transform_3, window_bounds = array<i64: 3, 32, 9>}, {pipeline_mode = #tpu.pipeline_mode<synchronous>, transform_indices = @transform_4, window_bounds = array<i64: 32, 1>}, {transform_indices = @transform_5, window_bounds = array<i64: 1, 32, 128>}]} {
    %c128_i32 = arith.constant 128 : i32
    %0 = arith.muli %arg1, %c128_i32 : i32
    %1 = tpu.assume_multiple %0, 128 : i32
    %c0 = arith.constant 0 : index
    %c0_0 = arith.constant 0 : index
    %2 = arith.index_cast %1 : i32 to index
    %3 = vector.load %arg2[%c0, %c0_0, %2] : memref<1x3x256xf32, #tpu.memory_space<vmem>>, vector<1x3x128xf32>
    %4 = vector.shape_cast %3 : vector<1x3x128xf32> to vector<3x128xf32>
    %c128_i32_1 = arith.constant 128 : i32
    %5 = arith.subi %1, %c128_i32_1 : i32
    %c0_i32 = arith.constant 0 : i32
    %6 = arith.maxsi %5, %c0_i32 : i32
    %7 = tpu.assume_multiple %6, 128 : i32
    %c128_i32_2 = arith.constant 128 : i32
    %8 = arith.addi %1, %c128_i32_2 : i32
    %c128_i32_3 = arith.constant 128 : i32
    %9 = arith.minsi %8, %c128_i32_3 : i32
    %10 = tpu.assume_multiple %9, 128 : i32
    %c0_4 = arith.constant 0 : index
    %c0_5 = arith.constant 0 : index
    %11 = arith.index_cast %7 : i32 to index
    %12 = vector.load %arg2[%c0_4, %c0_5, %11] : memref<1x3x256xf32, #tpu.memory_space<vmem>>, vector<1x3x128xf32>
    %13 = vector.shape_cast %12 : vector<1x3x128xf32> to vector<3x128xf32>
    %14 = vector.extract_strided_slice %13 {offsets = [0, 112], sizes = [3, 16], strides = [1, 1]} : vector<3x128xf32> to vector<3x16xf32>
    %c0_6 = arith.constant 0 : index
    %c0_7 = arith.constant 0 : index
    %15 = arith.index_cast %10 : i32 to index
    %16 = vector.load %arg2[%c0_6, %c0_7, %15] : memref<1x3x256xf32, #tpu.memory_space<vmem>>, vector<1x3x128xf32>
    %17 = vector.shape_cast %16 : vector<1x3x128xf32> to vector<3x128xf32>
    %18 = vector.extract_strided_slice %17 {offsets = [0, 0], sizes = [3, 16], strides = [1, 1]} : vector<3x128xf32> to vector<3x16xf32>
    %c0_i32_8 = arith.constant 0 : i32
    %19 = arith.cmpi sgt, %arg1, %c0_i32_8 : i32
    %cst = arith.constant 0.000000e+00 : f32
    %20 = vector.broadcast %cst : f32 to vector<3x16xf32>
    %21 = arith.select %19, %14, %20 : vector<3x16xf32>
    %c1_i32 = arith.constant 1 : i32
    %22 = arith.cmpi slt, %arg1, %c1_i32 : i32
    %cst_9 = arith.constant 0.000000e+00 : f32
    %23 = vector.broadcast %cst_9 : f32 to vector<3x16xf32>
    %24 = arith.select %22, %18, %23 : vector<3x16xf32>
    %25 = vector.extract_strided_slice %4 {offsets = [0, 0], sizes = [3, 112], strides = [1, 1]} : vector<3x128xf32> to vector<3x112xf32>
    %26 = tpu.concatenate %21, %25 in 1 : vector<3x16xf32>, vector<3x112xf32> -> vector<3x128xf32>
    %27 = vector.extract_strided_slice %4 {offsets = [0, 16], sizes = [3, 112], strides = [1, 1]} : vector<3x128xf32> to vector<3x112xf32>
    %28 = tpu.concatenate %27, %24 in 1 : vector<3x112xf32>, vector<3x16xf32> -> vector<3x128xf32>
    %29 = tpu.concatenate %26, %4, %28 in 0 : vector<3x128xf32>, vector<3x128xf32>, vector<3x128xf32> -> vector<9x128xf32>
    %c1_i32_10 = arith.constant 1 : i32
    %30 = tpu.dynamic_rotate %29 by %c1_i32_10 dim 1 : vector<9x128xf32>, i32 -> vector<9x128xf32>
    %c0_11 = arith.constant 0 : index
    %c0_12 = arith.constant 0 : index
    %31 = vector.load %arg3[%c0_11, %c0_12] : memref<1x128xf32, #tpu.memory_space<vmem>>, vector<1x128xf32>
    %32 = vector.broadcast %31 : vector<1x128xf32> to vector<9x128xf32>
    %33 = arith.mulf %30, %32 : vector<9x128xf32>
    %c127_i32 = arith.constant 127 : i32
    %34 = tpu.dynamic_rotate %29 by %c127_i32 dim 1 : vector<9x128xf32>, i32 -> vector<9x128xf32>
    %c0_13 = arith.constant 0 : index
    %c0_14 = arith.constant 0 : index
    %35 = vector.load %arg4[%c0_13, %c0_14] : memref<1x128xf32, #tpu.memory_space<vmem>>, vector<1x128xf32>
    %36 = vector.broadcast %35 : vector<1x128xf32> to vector<9x128xf32>
    %37 = arith.mulf %34, %36 : vector<9x128xf32>
    %c1 = arith.constant 1 : index
    %c0_15 = arith.constant 0 : index
    %c0_16 = arith.constant 0 : index
    %38 = vector.load %arg5[%c1, %c0_15, %c0_16] : memref<3x32x9xf32, #tpu.memory_space<vmem>>, vector<1x32x9xf32>
    %39 = vector.shape_cast %38 : vector<1x32x9xf32> to vector<32x9xf32>
    %cst_17 = arith.constant dense<0.000000e+00> : vector<32x128xf32>
    %40 = tpu.matmul %39, %29, %cst_17 {dimension_numbers = #tpu.dot_dimension_numbers<[1], [0], [0], [1], [0, 0, 1, 1], [], []>} : vector<32x9xf32>, vector<9x128xf32>, vector<32x128xf32> -> vector<32x128xf32>
    %c0_18 = arith.constant 0 : index
    %c0_19 = arith.constant 0 : index
    %c0_20 = arith.constant 0 : index
    %41 = vector.load %arg5[%c0_18, %c0_19, %c0_20] : memref<3x32x9xf32, #tpu.memory_space<vmem>>, vector<1x32x9xf32>
    %42 = vector.shape_cast %41 : vector<1x32x9xf32> to vector<32x9xf32>
    %cst_21 = arith.constant dense<0.000000e+00> : vector<32x128xf32>
    %43 = tpu.matmul %42, %33, %cst_21 {dimension_numbers = #tpu.dot_dimension_numbers<[1], [0], [0], [1], [0, 0, 1, 1], [], []>} : vector<32x9xf32>, vector<9x128xf32>, vector<32x128xf32> -> vector<32x128xf32>
    %44 = arith.addf %40, %43 : vector<32x128xf32>
    %c2 = arith.constant 2 : index
    %c0_22 = arith.constant 0 : index
    %c0_23 = arith.constant 0 : index
    %45 = vector.load %arg5[%c2, %c0_22, %c0_23] : memref<3x32x9xf32, #tpu.memory_space<vmem>>, vector<1x32x9xf32>
    %46 = vector.shape_cast %45 : vector<1x32x9xf32> to vector<32x9xf32>
    %cst_24 = arith.constant dense<0.000000e+00> : vector<32x128xf32>
    %47 = tpu.matmul %46, %37, %cst_24 {dimension_numbers = #tpu.dot_dimension_numbers<[1], [0], [0], [1], [0, 0, 1, 1], [], []>} : vector<32x9xf32>, vector<9x128xf32>, vector<32x128xf32> -> vector<32x128xf32>
    %48 = arith.addf %44, %47 : vector<32x128xf32>
    %c0_25 = arith.constant 0 : index
    %c0_26 = arith.constant 0 : index
    %49 = vector.load %arg6[%c0_25, %c0_26] : memref<32x1xf32, #tpu.memory_space<vmem>>, vector<32x1xf32>
    %50 = vector.broadcast %49 : vector<32x1xf32> to vector<32x128xf32>
    %51 = arith.addf %48, %50 : vector<32x128xf32>
    %cst_27 = arith.constant 0.000000e+00 : f32
    %52 = vector.broadcast %cst_27 : f32 to vector<32x128xf32>
    %53 = arith.cmpf oge, %51, %52 : vector<32x128xf32>
    %cst_28 = arith.constant 0.00999999977 : f32
    %54 = vector.broadcast %cst_28 : f32 to vector<32x128xf32>
    %55 = arith.mulf %54, %51 : vector<32x128xf32>
    %56 = arith.select %53, %51, %55 : vector<32x128xi1>, vector<32x128xf32>
    %c0_29 = arith.constant 0 : index
    %c0_30 = arith.constant 0 : index
    %c0_31 = arith.constant 0 : index
    %57 = vector.load %arg7[%c0_29, %c0_30, %c0_31] : memref<1x32x128xf32, #tpu.memory_space<vmem>>, vector<1x32x128xf32>
    %58 = vector.shape_cast %57 : vector<1x32x128xf32> to vector<32x128xf32>
    %59 = vector.shape_cast %56 : vector<32x128xf32> to vector<1x32x128xf32>
    tpu.vector_store %arg7[%c0_29, %c0_30, %c0_31], %59 {strides = array<i32>} : memref<1x32x128xf32, #tpu.memory_space<vmem>>, vector<1x32x128xf32>,
    return
  }
  func.func @transform_0(%arg0: i32, %arg1: i32) -> (i32, i32, i32) {
    %c0_i32 = arith.constant 0 : i32
    %c0_i32_0 = arith.constant 0 : i32
    %c0_i32_1 = arith.constant 0 : i32
    return %arg0, %c0_i32, %c0_i32_0 : i32, i32, i32
  }
  func.func @transform_1(%arg0: i32, %arg1: i32) -> (i32, i32) {
    %c0_i32 = arith.constant 0 : i32
    %c0_i32_0 = arith.constant 0 : i32
    %c0_i32_1 = arith.constant 0 : i32
    return %c0_i32, %c0_i32_0 : i32, i32
  }
  func.func @transform_2(%arg0: i32, %arg1: i32) -> (i32, i32) {
    %c0_i32 = arith.constant 0 : i32
    %c0_i32_0 = arith.constant 0 : i32
    %c0_i32_1 = arith.constant 0 : i32
    return %c0_i32, %c0_i32_0 : i32, i32
  }
  func.func @transform_3(%arg0: i32, %arg1: i32) -> (i32, i32, i32) {
    %c0_i32 = arith.constant 0 : i32
    %c0_i32_0 = arith.constant 0 : i32
    %c0_i32_1 = arith.constant 0 : i32
    %c0_i32_2 = arith.constant 0 : i32
    return %c0_i32, %c0_i32_0, %c0_i32_1 : i32, i32, i32
  }
  func.func @transform_4(%arg0: i32, %arg1: i32) -> (i32, i32) {
    %c0_i32 = arith.constant 0 : i32
    %c0_i32_0 = arith.constant 0 : i32
    %c0_i32_1 = arith.constant 0 : i32
    return %c0_i32, %c0_i32_0 : i32, i32
  }
  func.func @transform_5(%arg0: i32, %arg1: i32) -> (i32, i32, i32) {
    %c0_i32 = arith.constant 0 : i32
    %c0_i32_0 = arith.constant 0 : i32
    return %arg0, %c0_i32, %arg1 : i32, i32, i32
  }
}

module attributes {stable_mosaic.version = 11 : i64} {
  func.func @_input_proj_kernel(%arg0: i32, %arg1: i32, %arg2: memref<1x3x256xf32, #tpu.memory_space<vmem>>, %arg3: memref<1x128xf32, #tpu.memory_space<vmem>>, %arg4: memref<1x128xf32, #tpu.memory_space<vmem>>, %arg5: memref<3x32x9xf32, #tpu.memory_space<vmem>>, %arg6: memref<32x1xf32, #tpu.memory_space<vmem>>, %arg7: memref<1x32x128xf32, #tpu.memory_space<vmem>>) attributes {dimension_semantics = [#tpu.dimension_semantics<parallel>, #tpu.dimension_semantics<parallel>], iteration_bounds = array<i64: 2, 2>, scalar_prefetch = 0 : i64, scratch_operands = 0 : i64, tpu.core_type = #tpu.core_type<tc>, window_params = [{transform_indices = @transform_0, window_bounds = array<i64: 1, 3, 256>}, {pipeline_mode = #tpu.pipeline_mode<synchronous>, transform_indices = @transform_1, window_bounds = array<i64: 1, 128>}, {pipeline_mode = #tpu.pipeline_mode<synchronous>, transform_indices = @transform_2, window_bounds = array<i64: 1, 128>}, {pipeline_mode = #tpu.pipeline_mode<synchronous>, transform_indices = @transform_3, window_bounds = array<i64: 3, 32, 9>}, {pipeline_mode = #tpu.pipeline_mode<synchronous>, transform_indices = @transform_4, window_bounds = array<i64: 32, 1>}, {transform_indices = @transform_5, window_bounds = array<i64: 1, 32, 128>}]} {
    %c128_i32 = arith.constant 128 : i32
    %0 = arith.muli %arg1, %c128_i32 : i32
    %1 = tpu.assume_multiple %0, 128 : i32
    %c0 = arith.constant 0 : index
    %c0_0 = arith.constant 0 : index
    %2 = arith.index_cast %1 : i32 to index
    %3 = vector.load %arg2[%c0, %c0_0, %2] : memref<1x3x256xf32, #tpu.memory_space<vmem>>, vector<1x3x128xf32>
    %4 = vector.shape_cast %3 : vector<1x3x128xf32> to vector<3x128xf32>
    %c128_i32_1 = arith.constant 128 : i32
    %5 = arith.subi %1, %c128_i32_1 : i32
    %c0_i32 = arith.constant 0 : i32
    %6 = arith.maxsi %5, %c0_i32 : i32
    %7 = tpu.assume_multiple %6, 128 : i32
    %c128_i32_2 = arith.constant 128 : i32
    %8 = arith.addi %1, %c128_i32_2 : i32
    %c128_i32_3 = arith.constant 128 : i32
    %9 = arith.minsi %8, %c128_i32_3 : i32
    %10 = tpu.assume_multiple %9, 128 : i32
    %c0_4 = arith.constant 0 : index
    %c0_5 = arith.constant 0 : index
    %11 = arith.index_cast %7 : i32 to index
    %12 = vector.load %arg2[%c0_4, %c0_5, %11] : memref<1x3x256xf32, #tpu.memory_space<vmem>>, vector<1x3x128xf32>
    %13 = vector.shape_cast %12 : vector<1x3x128xf32> to vector<3x128xf32>
    %14 = vector.extract_strided_slice %13 {offsets = [0, 112], sizes = [3, 16], strides = [1, 1]} : vector<3x128xf32> to vector<3x16xf32>
    %c0_6 = arith.constant 0 : index
    %c0_7 = arith.constant 0 : index
    %15 = arith.index_cast %10 : i32 to index
    %16 = vector.load %arg2[%c0_6, %c0_7, %15] : memref<1x3x256xf32, #tpu.memory_space<vmem>>, vector<1x3x128xf32>
    %17 = vector.shape_cast %16 : vector<1x3x128xf32> to vector<3x128xf32>
    %18 = vector.extract_strided_slice %17 {offsets = [0, 0], sizes = [3, 16], strides = [1, 1]} : vector<3x128xf32> to vector<3x16xf32>
    %c0_i32_8 = arith.constant 0 : i32
    %19 = arith.cmpi sgt, %arg1, %c0_i32_8 : i32
    %cst = arith.constant 0.000000e+00 : f32
    %20 = vector.broadcast %cst : f32 to vector<3x16xf32>
    %21 = arith.select %19, %14, %20 : vector<3x16xf32>
    %c1_i32 = arith.constant 1 : i32
    %22 = arith.cmpi slt, %arg1, %c1_i32 : i32
    %cst_9 = arith.constant 0.000000e+00 : f32
    %23 = vector.broadcast %cst_9 : f32 to vector<3x16xf32>
    %24 = arith.select %22, %18, %23 : vector<3x16xf32>
    %25 = vector.extract_strided_slice %4 {offsets = [0, 0], sizes = [3, 112], strides = [1, 1]} : vector<3x128xf32> to vector<3x112xf32>
    %26 = tpu.concatenate %21, %25 in 1 : vector<3x16xf32>, vector<3x112xf32> -> vector<3x128xf32>
    %27 = vector.extract_strided_slice %4 {offsets = [0, 16], sizes = [3, 112], strides = [1, 1]} : vector<3x128xf32> to vector<3x112xf32>
    %28 = tpu.concatenate %27, %24 in 1 : vector<3x112xf32>, vector<3x16xf32> -> vector<3x128xf32>
    %29 = tpu.concatenate %26, %4, %28 in 0 : vector<3x128xf32>, vector<3x128xf32>, vector<3x128xf32> -> vector<9x128xf32>
    %c1_i32_10 = arith.constant 1 : i32
    %30 = tpu.dynamic_rotate %29 by %c1_i32_10 dim 1 : vector<9x128xf32>, i32 -> vector<9x128xf32>
    %c0_11 = arith.constant 0 : index
    %c0_12 = arith.constant 0 : index
    %31 = vector.load %arg3[%c0_11, %c0_12] : memref<1x128xf32, #tpu.memory_space<vmem>>, vector<1x128xf32>
    %32 = vector.broadcast %31 : vector<1x128xf32> to vector<9x128xf32>
    %33 = arith.mulf %30, %32 : vector<9x128xf32>
    %c127_i32 = arith.constant 127 : i32
    %34 = tpu.dynamic_rotate %29 by %c127_i32 dim 1 : vector<9x128xf32>, i32 -> vector<9x128xf32>
    %c0_13 = arith.constant 0 : index
    %c0_14 = arith.constant 0 : index
    %35 = vector.load %arg4[%c0_13, %c0_14] : memref<1x128xf32, #tpu.memory_space<vmem>>, vector<1x128xf32>
    %36 = vector.broadcast %35 : vector<1x128xf32> to vector<9x128xf32>
    %37 = arith.mulf %34, %36 : vector<9x128xf32>
    %c1 = arith.constant 1 : index
    %c0_15 = arith.constant 0 : index
    %c0_16 = arith.constant 0 : index
    %38 = vector.load %arg5[%c1, %c0_15, %c0_16] : memref<3x32x9xf32, #tpu.memory_space<vmem>>, vector<1x32x9xf32>
    %39 = vector.shape_cast %38 : vector<1x32x9xf32> to vector<32x9xf32>
    %cst_17 = arith.constant dense<0.000000e+00> : vector<32x128xf32>
    %40 = tpu.matmul %39, %29, %cst_17 {dimension_numbers = #tpu.dot_dimension_numbers<[1], [0], [0], [1], [0, 0, 1, 1], [], []>} : vector<32x9xf32>, vector<9x128xf32>, vector<32x128xf32> -> vector<32x128xf32>
    %c0_18 = arith.constant 0 : index
    %c0_19 = arith.constant 0 : index
    %c0_20 = arith.constant 0 : index
    %41 = vector.load %arg5[%c0_18, %c0_19, %c0_20] : memref<3x32x9xf32, #tpu.memory_space<vmem>>, vector<1x32x9xf32>
    %42 = vector.shape_cast %41 : vector<1x32x9xf32> to vector<32x9xf32>
    %cst_21 = arith.constant dense<0.000000e+00> : vector<32x128xf32>
    %43 = tpu.matmul %42, %33, %cst_21 {dimension_numbers = #tpu.dot_dimension_numbers<[1], [0], [0], [1], [0, 0, 1, 1], [], []>} : vector<32x9xf32>, vector<9x128xf32>, vector<32x128xf32> -> vector<32x128xf32>
    %44 = arith.addf %40, %43 : vector<32x128xf32>
    %c2 = arith.constant 2 : index
    %c0_22 = arith.constant 0 : index
    %c0_23 = arith.constant 0 : index
    %45 = vector.load %arg5[%c2, %c0_22, %c0_23] : memref<3x32x9xf32, #tpu.memory_space<vmem>>, vector<1x32x9xf32>
    %46 = vector.shape_cast %45 : vector<1x32x9xf32> to vector<32x9xf32>
    %cst_24 = arith.constant dense<0.000000e+00> : vector<32x128xf32>
    %47 = tpu.matmul %46, %37, %cst_24 {dimension_numbers = #tpu.dot_dimension_numbers<[1], [0], [0], [1], [0, 0, 1, 1], [], []>} : vector<32x9xf32>, vector<9x128xf32>, vector<32x128xf32> -> vector<32x128xf32>
    %48 = arith.addf %44, %47 : vector<32x128xf32>
    %c0_25 = arith.constant 0 : index
    %c0_26 = arith.constant 0 : index
    %49 = vector.load %arg6[%c0_25, %c0_26] : memref<32x1xf32, #tpu.memory_space<vmem>>, vector<32x1xf32>
    %50 = vector.broadcast %49 : vector<32x1xf32> to vector<32x128xf32>
    %51 = arith.addf %48, %50 : vector<32x128xf32>
    %cst_27 = arith.constant 0.000000e+00 : f32
    %52 = vector.broadcast %cst_27 : f32 to vector<32x128xf32>
    %53 = arith.cmpf oge, %51, %52 : vector<32x128xf32>
    %cst_28 = arith.constant 0.00999999977 : f32
    %54 = vector.broadcast %cst_28 : f32 to vector<32x128xf32>
    %55 = arith.mulf %54, %51 : vector<32x128xf32>
    %56 = arith.select %53, %51, %55 : vector<32x128xi1>, vector<32x128xf32>
    %c0_29 = arith.constant 0 : index
    %c0_30 = arith.constant 0 : index
    %c0_31 = arith.constant 0 : index
    %57 = vector.load %arg7[%c0_29, %c0_30, %c0_31] : memref<1x32x128xf32, #tpu.memory_space<vmem>>, vector<1x32x128xf32>
    %58 = vector.shape_cast %57 : vector<1x32x128xf32> to vector<32x128xf32>
    %59 = vector.shape_cast %56 : vector<32x128xf32> to vector<1x32x128xf32>
    tpu.vector_store %arg7[%c0_29, %c0_30, %c0_31], %59 {strides = array<i32>} : memref<1x32x128xf32, #tpu.memory_space<vmem>>, vector<1x32x128xf32>,
    return
  }
  func.func @transform_0(%arg0: i32, %arg1: i32) -> (i32, i32, i32) {
    %c0_i32 = arith.constant 0 : i32
    %c0_i32_0 = arith.constant 0 : i32
    %c0_i32_1 = arith.constant 0 : i32
    return %arg0, %c0_i32, %c0_i32_0 : i32, i32, i32
  }
  func.func @transform_1(%arg0: i32, %arg1: i32) -> (i32, i32) {
    %c0_i32 = arith.constant 0 : i32
    %c0_i32_0 = arith.constant 0 : i32
    %c0_i32_1 = arith.constant 0 : i32
    return %c0_i32, %c0_i32_0 : i32, i32
  }
  func.func @transform_2(%arg0: i32, %arg1: i32) -> (i32, i32) {
    %c0_i32 = arith.constant 0 : i32
    %c0_i32_0 = arith.constant 0 : i32
    %c0_i32_1 = arith.constant 0 : i32
    return %c0_i32, %c0_i32_0 : i32, i32
  }
  func.func @transform_3(%arg0: i32, %arg1: i32) -> (i32, i32, i32) {
    %c0_i32 = arith.constant 0 : i32
    %c0_i32_0 = arith.constant 0 : i32
    %c0_i32_1 = arith.constant 0 : i32
    %c0_i32_2 = arith.constant 0 : i32
    return %c0_i32, %c0_i32_0, %c0_i32_1 : i32, i32, i32
  }
  func.func @transform_4(%arg0: i32, %arg1: i32) -> (i32, i32) {
    %c0_i32 = arith.constant 0 : i32
    %c0_i32_0 = arith.constant 0 : i32
    %c0_i32_1 = arith.constant 0 : i32
    return %c0_i32, %c0_i32_0 : i32, i32
  }
  func.func @transform_5(%arg0: i32, %arg1: i32) -> (i32, i32, i32) {
    %c0_i32 = arith.constant 0 : i32
    %c0_i32_0 = arith.constant 0 : i32
    return %arg0, %c0_i32, %arg1 : i32, i32, i32
  }
}

</mosaic_0001>

<bundles_post_ra>
// kernel: tpu_custom_call.1
= control target key start
LH: loop header
LB: loop body
LE: loop exit
PB: predicated region body
PF: predicated region fallthrough
CT: control target
= control target key end

     0   :  { %10 = vsyncpa [#allocation3], 0  ;;  %s1312_s0 = inlined_call_operand.vmem [shape: f32[2,3,256], index: 0, kind: input, shape index: {}]   ;;  %s1313_s1 = inlined_call_operand.vmem [shape: f32[1,128], index: 1, kind: input, shape index: {}]   ;;  %s1314_s2 = inlined_call_operand.vmem [shape: f32[1,128], index: 2, kind: input, shape index: {}]   ;;  %s1315_s3 = inlined_call_operand.vmem [shape: f32[3,32,9], index: 3, kind: input, shape index: {}]   ;;  %s1316_s4 = inlined_call_operand.vmem [shape: f32[32,1], index: 4, kind: input, shape index: {}]   ;;  %s1317_s5 = inlined_call_operand.hbm [shape: f32[2,32,256], index: 5, kind: output, shape index: {}]  }
   0x1   :  { %12 = vsyncpa [#allocation3 + $0x1], 0  ;;  %s1094_s18 = smov 0   ;;  %s1096_s19 = smov 0  }
   0x2   :  { %s1098_s20 = smov 0   ;;  %s1100_s21 = smov 0  }
   0x3   :  { %s1102_s22 = smov 0   ;;  %s1104_s23 = smov 0  }
   0x4   :  { %s1106_s24 = smov 0   ;;  %s1108_s25 = smov 0  }
   0x5 LB: > { %1321 = sst [smem:[#allocation5_spill]] %s1049_s24  ;;  %s785_s26 = sadd.s32 4294967295, %s1053_s25   ;;  %s1053_s25 = sphi %s1108_s25, %s18_s25   ;;  %s1049_s24 = sphi %s1106_s24, %s1328_s24   ;;  %s1045_s23 = sphi %s1104_s23, %s1333_s23   ;;  %s1041_s22 = sphi %s1102_s22, %s1326_s22   ;;  %s1037_s21 = sphi %s1100_s21, %s1332_s21   ;;  %s1033_s20 = sphi %s1098_s20, %s1331_s20   ;;  %s1029_s19 = sphi %s1096_s19, %s1330_s19   ;;  %s1025_s18 = sphi %s1094_s18, %s1329_s18  }
   0x6   : > { %s786_s27 = sadd.s32 4294967294, %s1053_s25   ;;  %s27_s28 = sadd.s32 1, %s1045_s23 }
   0x7   : > { %p28_p0 = scmp.ge.s32.totalorder %s27_s28, 2  ;;  %s30_s29 = sadd.s32 1, %s1049_s24 }
   0x8   : > { %p159_p1 = scmp.ne.s32.totalorder %s1033_s20, %s1029_s19  ;;  %p160_p2 = scmp.eq.s32.totalorder %s785_s26, 3 }
   0x9   : > { %s1335_s28 = smov (%p28_p0, %s27_s28), 0  ;;  %s1337_s29 = smov (!%p28_p0, %s30_s29), %s1049_s24 }
   0xa   : > { %1322 = sst [smem:[#allocation6_spill]] %s1335_s28  ;;  %s145_s30 = ssub.s32 %s1045_s23, %s1335_s28 }
   0xb   : > { %p1145_p3 = por %p160_p2, %p159_p1  ;;  %p32_p4 = scmp.ge.s32.totalorder %s1337_s29, 2 }
   0xc   : > { %p165_p5 = scmp.ne.s32.totalorder %s1029_s19, %s1025_s18  ;;  %p166_p6 = scmp.eq.s32.totalorder %s786_s27, 3 }
   0xd   : > { %p788_p7 = scmp.ge.s32.totalorder %s1053_s25, 1  ;;  %s1339_s29 = smov (%p32_p4, %s1337_s29), 0 }
   0xe   : > { %1324 = sst [smem:[#allocation7_spill]] %s1339_s29  ;;  %p1154_p8 = por %p166_p6, %p165_p5 }
   0xf   : > { %p204_p9 = scmp.lt.s32.totalorder %s1053_s25, 5  ;;  %s144_s8 = ssub.s32 %s1049_s24, %s1339_s29 }
  0x10   : > { %s149_s9 = sadd.s32 1, %s1033_s20  ;;  %s146_s10 = sor.u32 %s145_s30, %s144_s8 }
  0x11   : > { %p205_p10 = pnand %p788_p7, %p204_p9  ;;  %p147_p11 = scmp.eq.s32.totalorder %s146_s10, 0 }
  0x12   : > { %p232_p12 = scmp.lt.s32.totalorder (!%p205_p10), %s1041_s22, 1  ;;  %s792_s12 = sshll.u32 (!%p205_p10), %s1037_s21, 7 }
  0x13   : > { %s1163_s11 = scalar_select %p147_p11, %s1033_s20, %s149_s9  }
  0x14   : > { %208 = sbr.rel (%p205_p10) target bundleno = 505 (0x1f9), region = 40  ;;  %s238_s13 = sshra.s32 (!%p205_p10), %s792_s12, 7 }
  0x15   : > { %s793_s15 = sshll.u32 (!%p205_p10), %s238_s13, 2  ;;  %s794_s16 = sadd.s32 (!%p205_p10), 4294967168, %s792_s12 }
  0x16   : > { %p244_p13 = scmp.gt.s32.totalorder (!%p205_p10), %s794_s16, 0  ;;  %p259_p0 = scmp.gt.s32.totalorder (!%p205_p10), %s1037_s21, 0 }
  0x17   : > { %s1055_s9 = smov (!%p205_p10), 112   ;;  %s246_s28 = sadd.s32 (!%p205_p10), 128, %s792_s12 }
  0x18   : > { %p247_p1 = scmp.lt.s32.totalorder (!%p205_p10), %s246_s28, 128  ;;  %p264_p2 = scmp.lt.s32.totalorder (!%p205_p10), %s1037_s21, 1 }
  0x19   : > { %s233_s14 = scalar_select %p232_p12, %s1041_s22, 1  ;;  %v330_v9 = vld [vmem:[%s1315_s3 + $0x10] sm:$0xff]  ;;  %vm332_vm2 = vcmask 72704   ;;  %v328_v10 = vld [vmem:[%s1315_s3] sm:$0xff]  ;;  %vm277_vm3 = vcmask 130048   ;;  %vm286_vm4 = vcmask 916480  }
  0x1a   : > { %s1341_s16 = smov (!%p244_p13, %s794_s16), 0  ;;  %s1343_s28 = smov (!%p247_p1, %s246_s28), 128  ;;  %853 = vmatprep.mubr.msk.f32.mxu1 %vm332_vm2, %v330_v9  ;;  %850 = vmatprep.mubr.msk.f32.mxu0 %vm332_vm2, %v328_v10  ;;  %vm293_vm5 = vcmask 1042432   ;;  %vm295_vm6 = vcmask 1045504   ;;  %v1059_v19 = vmov 0   ;;  %v642_v20 = vld [vmem:[%s1316_s4] sm:$0xff] }
  0x1b   : > { %s827_s17 = sshll.u32 %s233_s14, 3  ;;  %s249_s29 = sshra.s32 %s1341_s16, 7  ;;  %959 = vset.pattern.permute.xlu0 %v1059_v19  ;;  %960 = vset.pattern.permute.xlu1 %v1059_v19  ;;  %v643_v21 = vld [vmem:[%s1316_s4 + $0x8] sm:$0xff]  ;;  %v645_v22 = vld [vmem:[%s1316_s4 + $0x18] sm:$0xff]  ;;  %v644_v23 = vld [vmem:[%s1316_s4 + $0x10] sm:$0xff]  ;;  %vm345_vm7 = vcmask 1040384  }
  0x1c   : > { %s236_s30 = scalar_lea.vmem %s1312_s0, %s827_s17  ;;  %s795_s24 = sshll.u32 %s249_s29, 2  ;;  %v797_v24 = vld [vmem:[%s1313_s1] ss:$0 sm:$0xff]  ;;  %v331_v31 = vld [vmem:[%s1315_s3 + $0x18] sm:$0xff]  ;;  %v329_v34 = vld [vmem:[%s1315_s3 + $0x8] sm:$0xff] }
  0x1d   : > { %s241_s8 = scalar_lea.vmem %s236_s30, %s793_s15  ;;  %s252_s13 = scalar_lea.vmem %s236_s30, %s795_s24  ;;  %v798_v29 = vld [vmem:[%s1314_s2] ss:$0 sm:$0xff]  ;;  %v800_v37 = vld [vmem:[%s1315_s3 + $0x28] sm:$0xff]  ;;  %v801_v39 = vld [vmem:[%s1315_s3 + $0x30] sm:$0xff] }
  0x1e   : > { %v242_v0 = vld [vmem:[%s241_s8] sm:$0x7]  ;;  %s260_s10 = scalar_select %p259_p0, 1, 0  ;;  %v814_v40 = vld [vmem:[%s1315_s3 + $0x48] sm:$0xff]  ;;  %v815_v41 = vld [vmem:[%s1315_s3 + $0x50] sm:$0xff] }
  0x1f   : > { %279 = vrot.lane.b32.xlu0 %v242_v0, %s1055_s9  ;;  %v253_v2 = vld [vmem:[%s252_s13] sm:$0x7]  ;;  %s265_s14 = scalar_select %p264_p2, 1, 0  ;;  %v288_v11 = vrot.slane %v242_v0, 5  ;;  %v802_v42 = vld [vmem:[%s1315_s3 + $0x38] sm:$0xff] }
  0x20   : > { %v261_v1 = vstv %s260_s10  ;;  %s1056_s17 = smov 16   ;;  %s254_s15 = sshra.s32 %s1343_s28, 7  ;;  %v799_v36 = vld [vmem:[%s1315_s3 + $0x20] sm:$0xff]  ;;  %v816_v43 = vld [vmem:[%s1315_s3 + $0x58] sm:$0xff] }
  0x21   : > { %vm262_vm0 = vcmp.eq.s32.totalorder %v261_v1, 1  ;;  %s796_s26 = sshll.u32 %s254_s15, 2  ;;  %v266_v4 = vstv %s265_s14  ;;  %s1057_s28 = smov 1   ;;  %v813_v38 = vld [vmem:[%s1315_s3 + $0x40] sm:$0xff] }
  0x22   : > { %v263_v3 = vsel %vm262_vm0, %v253_v2, 0.0  ;;  %s257_s27 = scalar_lea.vmem %s236_s30, %s796_s26  ;;  %vm267_vm1 = vcmp.eq.s32.totalorder %v266_v4, 1  ;;  %s1058_s30 = smov 127  }
  0x23   : > { %270 = vrot.lane.b32.xlu1 %v263_v3, %s1056_s17  ;;  %v258_v5 = vld [vmem:[%s257_s27] sm:$0x7]  ;;  %s229_s10 = sand.u32 1, %s1029_s19   ;;  %s823_s14 = sshll.u32 %s1041_s22, 3 }
  0x24   : > { %v268_v6 = vsel %vm267_vm1, %v258_v5, 0.0  ;;  %s789_s13 = sshll.u32 %s229_s10, 5  ;;  %s1261_s29 = scalar_lea.sflag [#allocation3], %s229_s10 }
  0x25   : > { %283 = vrot.lane.b32.xlu0 %v268_v6, %s1055_s9  ;;  %s231_s15 = scalar_lea.vmem [#allocation2], %s789_s13  ;;  %s1060_s16 = smov [#allocation2]  }
  0x26   : > { %s701_s26 = sshll.u32 %s231_s15, 4  ;;  %s1252_s26 = int_to_ptr.vmem [resolvable:$true] %s701_s26 }
  0x27   : > { %274 = vrot.lane.b32.xlu1 %v242_v0, %s1056_s17  ;;  %s698_s17 = sadd.s32 %s1037_s21, %s823_s14  ;;  %s961_s12 = scalar_lea.vmem %s1252_s26, 512 }
  0x28   : > { %s824_s22 = sshll.u32 %s698_s17, 7  ;;  %p962_p4 = scmp.ne.s32.totalorder %s1252_s26, %s961_s12 }
  0x29   : > { %s1257_s24 = scalar_lea.hbm %s1317_s5, %s824_s22 }
  0x2a   : > { %p963_p5 = pnand %p962_p4, %p1145_p3 }
  0x2c   : > { %p964_p6 = pneg %p963_p5 }
  0x91   : > { %v280_v7 = vpop.permute.xlu0 %279 }
  0x95   : > { %v271_v8 = vpop.permute.xlu1 %270 }
  0x97   : > { %v284_v13 = vpop.permute.xlu0 %283 }
  0x98   : > { %v287_v15 = vsel %vm286_vm4, %v280_v7, %v284_v13 }
  0x99   : > { %v275_v12 = vpop.permute.xlu1 %274  ;;  %v291_v17 = vrot.slane %v287_v15, 2 }
  0x9a   : > { %v278_v14 = vsel %vm277_vm3, %v271_v8, %v275_v12 }
  0x9b   : > { %v294_v16 = vsel %vm293_vm5, %v278_v14, %v288_v11  ;;  %299 = vrot.lane.b32.xlu0 %v291_v17, %s1057_s28 }
  0x9c   : > { %v296_v18 = vsel %vm295_vm6, %v294_v16, %v291_v17 }
  0x9d   : > { %297 = vrot.lane.b32.xlu1 %v296_v18, %s1057_s28  ;;  %s965_s28 = sshll.u32 %s1060_s16, 4  ;;  %s966_s28 = int_to_ptr.vmem [resolvable:$false] %s965_s28 }
  0x9e   : > { %p968_p7 = scmp.lt.s32.totalorder %s1252_s26, %s966_s28 }
  0x9f   : > { %312 = vrot.lane.b32.xlu0 %v291_v17, %s1058_s30 }
  0xa1   : > { %310 = vrot.lane.b32.xlu1 %v296_v18, %s1058_s30  ;;  %s967_s30 = scalar_lea.vmem %s966_s28, 1024 }
  0xa2   : > { %p969_p9 = scmp.lt.s32.totalorder %s967_s30, %s961_s12 }
  0xa3   : > { %648 = vperm.xlu0 %959, %v642_v20  }
  0xa4   : > { %p970_p10 = por %p969_p9, %p968_p7 }
  0xa5   : > { %653 = vperm.xlu1 %960, %v643_v21  }
  0xa6   : > { %p971_p11 = pnand %p970_p10, %p964_p6 }
  0xa7   : > { %663 = vperm.xlu0 %959, %v645_v22  }
  0xa9   : > { %658 = vperm.xlu1 %960, %v644_v23  }
 0x10d   : > { %v300_v25 = vpop.permute.xlu0 %299 }
 0x10e   : > { %v309_v26 = vmul.f32 %v797_v24, %v300_v25 }
 0x10f   : > { %v298_v27 = vpop.permute.xlu1 %297 }
 0x110   : > { %v308_v28 = vmul.f32 %v797_v24, %v298_v27  ;;  %846 = vmatprep.subr.msk.mxu0 %vm345_vm7, %v309_v26  ;;  %876 = vmatprep.subr.msk.mxu1 %vm345_vm7, %v309_v26 }
 0x111   : > { %847 = vmatpush3.msk.msra.mxu0 %vm345_vm7, %v309_v26  ;;  %878 = vmatpush3.msk.msra.mxu1 %vm345_vm7, %v309_v26  ;;  %v313_v30 = vpop.permute.xlu0 %312 }
 0x112   : > { %v322_v32 = vmul.f32 %v798_v29, %v313_v30  ;;  %848 = vmatprep.subr.mxu0 %v308_v28  ;;  %877 = vmatprep.subr.mxu1 %v308_v28 }
 0x113   : > { %v311_v33 = vpop.permute.xlu1 %310  ;;  %849 = vmatpush3.msra.mxu0 %v308_v28  ;;  %879 = vmatpush3.msra.mxu1 %v308_v28 }
 0x114   : > { %v321_v35 = vmul.f32 %v798_v29, %v311_v33  ;;  %854 = vmatmul.mubr.msk.f32.vlgmr.msra.gmra.mxu1 %vm332_vm2, %v331_v31  ;;  %856 = vmatprep.subr.msk.mxu1 %vm345_vm7, %v291_v17 }
 0x115   : > { %866 = vmatprep.subr.msk.mxu0 %vm345_vm7, %v322_v32  ;;  %851 = vmatmul.mubr.msk.f32.vlgmr.msra.gmra.mxu0 %vm332_vm2, %v329_v34 }
 0x116   : > { %857 = vmatpush3.msk.msra.mxu1 %vm345_vm7, %v291_v17  ;;  %867 = vmatpush3.msk.msra.mxu0 %vm345_vm7, %v322_v32 }
 0x117   : > { %858 = vmatprep.subr.mxu1 %v296_v18  ;;  %868 = vmatprep.subr.mxu0 %v321_v35 }
 0x118   : > { %859 = vmatpush3.msra.mxu1 %v296_v18  ;;  %860 = vmatprep.mubr.msk.f32.mxu1 %vm332_vm2, %v799_v36 }
 0x119   : > { %869 = vmatpush3.msra.mxu0 %v321_v35  ;;  %861 = vmatmul.mubr.msk.f32.vlgmr.msra.gmra.mxu1 %vm332_vm2, %v800_v37 }
 0x11a   : > { %870 = vmatprep.mubr.msk.f32.mxu0 %vm332_vm2, %v813_v38  ;;  %863 = vmatprep.mubr.msk.f32.mxu1 %vm332_vm2, %v801_v39 }
 0x11b   : > { %871 = vmatmul.mubr.msk.f32.vlgmr.msra.gmra.mxu0 %vm332_vm2, %v814_v40 }
 0x11c   : > { %873 = vmatprep.mubr.msk.f32.mxu0 %vm332_vm2, %v815_v41 }
 0x11d   : > { %864 = vmatmul.mubr.msk.f32.gmra.mxu1 %vm332_vm2, %v802_v42 }
 0x11e   : > { %v649_v50 = vpop.permute.xlu0 %648 }
 0x11f   : > { %874 = vmatmul.mubr.msk.f32.gmra.mxu0 %vm332_vm2, %v816_v43 }
 0x120   : > { %v654_v55 = vpop.permute.xlu1 %653 }
 0x122   : > { %v664_v3 = vpop.permute.xlu0 %663 }
 0x124   : > { %v659_v11 = vpop.permute.xlu1 %658 }
 0x1d4   : > { %v855_v44 = vpop.f32.mrf.mxu1 }
 0x1d5   : > { %v852_v45 = vpop.f32.mrf.mxu0 }
 0x1d6   : > { %v425_v46 = vpop.f32.mrf.mxu1 }
 0x1d7   : > { %v415_v47 = vpop.f32.mrf.mxu0 }
 0x1d9   : > { %v862_v48 = vpop.f32.mrf.mxu1 }
 0x1da   : > { %v520_v49 = vadd.f32 %v862_v48, %v852_v45 }
 0x1db   : > { %v872_v51 = vpop.f32.mrf.mxu0  ;;  %v514_v52 = vpop.f32.mrf.mxu1 }
 0x1dc   : > { %v639_v53 = vadd.f32 %v872_v51, %v520_v49  ;;  %v515_v54 = vadd.f32 %v514_v52, %v415_v47 }
 0x1dd   : > { %v619_v56 = vpop.f32.mrf.mxu0  ;;  %v865_v57 = vpop.f32.mrf.mxu1 }
 0x1de   : > { %v638_v58 = vadd.f32 %v619_v56, %v515_v54  ;;  %v667_v59 = vadd.f32 %v654_v55, %v639_v53  ;;  %v530_v60 = vadd.f32 %v865_v57, %v855_v44 }
 0x1df   : > { %v875_v61 = vpop.f32.mrf.mxu0  ;;  %v524_v62 = vpop.f32.mrf.mxu1 }
 0x1e0   : > { %v666_v63 = vadd.f32 %v649_v50, %v638_v58  ;;  %vm671_vm8 = vcmp.ge.f32.partialorder %v667_v59, 0.0  ;;  %v675_v0 = vmul.f32 0.01, %v667_v59  ;;  %v641_v1 = vadd.f32 %v875_v61, %v530_v60 }
 0x1e1   : > { %v525_v2 = vadd.f32 %v524_v62, %v425_v46  ;;  %v629_v7 = vpop.f32.mrf.mxu0 }
 0x1e2   : > { %vm670_vm9 = vcmp.ge.f32.partialorder %v666_v63, 0.0  ;;  %v674_v4 = vmul.f32 0.01, %v666_v63  ;;  %v679_v5 = vsel %vm671_vm8, %v667_v59, %v675_v0  ;;  %v669_v6 = vadd.f32 %v664_v3, %v641_v1 }
 0x1e3   : > { %683 = vst [vmem:[%s231_s15 + $0x8] sm:$0xff] %v679_v5  ;;  %v640_v8 = vadd.f32 %v629_v7, %v525_v2 }
 0x1e4   : > { %v678_v9 = vsel %vm670_vm9, %v666_v63, %v674_v4  ;;  %vm673_vm10 = vcmp.ge.f32.partialorder %v669_v6, 0.0  ;;  %v677_v10 = vmul.f32 0.01, %v669_v6 }
 0x1e5   : > { %682 = vst [vmem:[%s231_s15] sm:$0xff] %v678_v9  ;;  %v668_v12 = vadd.f32 %v659_v11, %v640_v8 }
 0x1e6   : > { %v681_v13 = vsel %vm673_vm10, %v669_v6, %v677_v10 }
 0x1e7   : > { %685 = vst [vmem:[%s231_s15 + $0x18] sm:$0xff] %v681_v13  ;;  %vm672_vm11 = vcmp.ge.f32.partialorder %v668_v12, 0.0  ;;  %v676_v14 = vmul.f32 0.01, %v668_v12 }
 0x1e9   : > { %v680_v15 = vsel %vm672_vm11, %v668_v12, %v676_v14 }
 0x1ea   : > { %684 = vst [vmem:[%s231_s15 + $0x10] sm:$0xff] %v680_v15 }
 0x1eb   : > { %974 = shalt.err (!%p971_p11)
}
 0x1ec   : > { %s975_s8 = scalar_lea.hbm %s1257_s24, 512  ;;  %s979_s13 = scalar_lea.hbm %s1317_s5, 2048 }
 0x1ed   : > { %p976_p12 = scmp.ne.s32.totalorder %s1257_s24, %s975_s8  ;;  %p980_p1 = scmp.lt.s32.totalorder %s1257_s24, %s1317_s5 }
 0x1ee   : > { %p981_p2 = scmp.lt.s32.totalorder %s979_s13, %s975_s8 }
 0x1ef   : > { %p977_p13 = pnand %p976_p12, %p1145_p3 }
 0x1f0   : > { %p982_p4 = por %p981_p2, %p980_p1 }
 0x1f1   : > { %p978_p0 = pneg %p977_p13 }
 0x1f3   : > { %p983_p5 = pnand %p982_p4, %p978_p0 }
 0x1f5   : > { %986 = shalt.err (!%p983_p5)
}
 0x1f6   : > { %s1061_s15 = smov 128   ;;  %s1062_s22 = smov 256  }
 0x1f7   : > { %s1063_s21 = smov 8  }
 0x1f8   : > { %880 = dma.vmem_to_hbm [thread:$0]  (%p1145_p3), %s1252_s26, 512, %s1257_s24, %s1261_s29, %s1061_s15, %s1062_s22, %s1063_s21  }
 0x1f9 PF: > { %p886_p6 = scmp.ge.s32.totalorder %s1053_s25, 2  ;;  %s716_s27 = sand.u32 1, %s1025_s18  }
 0x1fa   : > { %s717_s12 = scalar_lea.sflag [#allocation3], %s716_s27 }
 0x1fb   : > { %p883_p7 = pnand %p886_p6, %p1154_p8 }
 0x1fd   : > { %p884_p9 = pneg %p883_p7 }
 0x1ff   : > { %1020 = dma.done.wait (%p884_p9), %s717_s12, 512  }
 0x200   : > { %1022 = vsyncadd (%p884_p9), %s717_s12, 4294966784  ;;  %s18_s25 = sadd.s32 1, %s1053_s25   ;;  %s1326_s22 = sld [smem:[#allocation5_spill]] }
 0x201   : > { %p15_p10 = scmp.ge.s32.totalorder %s18_s25, 6   ;;  %s1327_s6 = sld [smem:[#allocation6_spill]] }
 0x202   : > { %s1328_s24 = sld [smem:[#allocation7_spill]]  ;;  %s1329_s18 = smov %s1029_s19 }
 0x203   : > { %s1330_s19 = smov %s1033_s20  ;;  %s1331_s20 = smov %s1163_s11 }
 0x204   : > { %s1332_s21 = smov %s1045_s23  ;;  %17 = sbr.rel (!%p15_p10) target bundleno = 5 (0x5), region = 80 }
 0x207   : > { %s1333_s23 = smov %s1327_s6 }
 0x209   :  { %722 = vsyncpa [#allocation3], 1 }
 0x20a   :  { %724 = vsyncpa [#allocation3 + $0x1], 1 }

// kernel: tpu_custom_call.1
= control target key start
LH: loop header
LB: loop body
LE: loop exit
PB: predicated region body
PF: predicated region fallthrough
CT: control target
= control target key end

     0   :  { %10 = vsyncpa [#allocation3], 0  ;;  %s1310_s0 = inlined_call_operand.vmem [shape: f32[2,3,256], index: 0, kind: input, shape index: {}]   ;;  %s1311_s1 = inlined_call_operand.vmem [shape: f32[1,128], index: 1, kind: input, shape index: {}]   ;;  %s1312_s2 = inlined_call_operand.vmem [shape: f32[1,128], index: 2, kind: input, shape index: {}]   ;;  %s1313_s3 = inlined_call_operand.vmem [shape: f32[3,32,9], index: 3, kind: input, shape index: {}]   ;;  %s1314_s4 = inlined_call_operand.vmem [shape: f32[32,1], index: 4, kind: input, shape index: {}]   ;;  %s1315_s5 = inlined_call_operand.hbm [shape: f32[2,32,256], index: 5, kind: output, shape index: {}]  }
   0x1   :  { %12 = vsyncpa [#allocation3 + $0x1], 0  ;;  %s1092_s18 = smov 0   ;;  %s1094_s19 = smov 0  }
   0x2   :  { %s1096_s20 = smov 0   ;;  %s1098_s21 = smov 0  }
   0x3   :  { %s1100_s22 = smov 0   ;;  %s1102_s23 = smov 0  }
   0x4   :  { %s1104_s24 = smov 0   ;;  %s1106_s25 = smov 0  }
   0x5 LB: > { %1319 = sst [smem:[#allocation5_spill]] %s1047_s24  ;;  %s782_s26 = sadd.s32 4294967295, %s1051_s25   ;;  %s1051_s25 = sphi %s1106_s25, %s18_s25   ;;  %s1047_s24 = sphi %s1104_s24, %s1326_s24   ;;  %s1043_s23 = sphi %s1102_s23, %s1331_s23   ;;  %s1039_s22 = sphi %s1100_s22, %s1324_s22   ;;  %s1035_s21 = sphi %s1098_s21, %s1330_s21   ;;  %s1031_s20 = sphi %s1096_s20, %s1329_s20   ;;  %s1027_s19 = sphi %s1094_s19, %s1328_s19   ;;  %s1023_s18 = sphi %s1092_s18, %s1327_s18  }
   0x6   : > { %s783_s27 = sadd.s32 4294967294, %s1051_s25   ;;  %s27_s28 = sadd.s32 1, %s1043_s23 }
   0x7   : > { %p28_p0 = scmp.ge.s32.totalorder %s27_s28, 2  ;;  %s30_s29 = sadd.s32 1, %s1047_s24 }
   0x8   : > { %p159_p1 = scmp.ne.s32.totalorder %s1031_s20, %s1027_s19  ;;  %p160_p2 = scmp.eq.s32.totalorder %s782_s26, 3 }
   0x9   : > { %s1333_s28 = smov (%p28_p0, %s27_s28), 0  ;;  %s1335_s29 = smov (!%p28_p0, %s30_s29), %s1047_s24 }
   0xa   : > { %1320 = sst [smem:[#allocation6_spill]] %s1333_s28  ;;  %s145_s30 = ssub.s32 %s1043_s23, %s1333_s28 }
   0xb   : > { %p1143_p3 = por %p160_p2, %p159_p1  ;;  %p32_p4 = scmp.ge.s32.totalorder %s1335_s29, 2 }
   0xc   : > { %p165_p5 = scmp.ne.s32.totalorder %s1027_s19, %s1023_s18  ;;  %p166_p6 = scmp.eq.s32.totalorder %s783_s27, 3 }
   0xd   : > { %p786_p7 = scmp.ge.s32.totalorder %s1051_s25, 1  ;;  %s1337_s29 = smov (%p32_p4, %s1335_s29), 0 }
   0xe   : > { %1322 = sst [smem:[#allocation7_spill]] %s1337_s29  ;;  %p1152_p8 = por %p166_p6, %p165_p5 }
   0xf   : > { %p204_p9 = scmp.lt.s32.totalorder %s1051_s25, 5  ;;  %s144_s8 = ssub.s32 %s1047_s24, %s1337_s29 }
  0x10   : > { %s149_s9 = sadd.s32 1, %s1031_s20  ;;  %s146_s10 = sor.u32 %s145_s30, %s144_s8 }
  0x11   : > { %p205_p10 = pnand %p786_p7, %p204_p9  ;;  %p147_p11 = scmp.eq.s32.totalorder %s146_s10, 0 }
  0x12   : > { %p232_p12 = scmp.lt.s32.totalorder (!%p205_p10), %s1039_s22, 1  ;;  %s790_s12 = sshll.u32 (!%p205_p10), %s1035_s21, 7 }
  0x13   : > { %s1161_s11 = scalar_select %p147_p11, %s1031_s20, %s149_s9  }
  0x14   : > { %208 = sbr.rel (%p205_p10) target bundleno = 505 (0x1f9), region = 40  ;;  %s238_s13 = sshra.s32 (!%p205_p10), %s790_s12, 7 }
  0x15   : > { %s791_s15 = sshll.u32 (!%p205_p10), %s238_s13, 2  ;;  %s792_s16 = sadd.s32 (!%p205_p10), 4294967168, %s790_s12 }
  0x16   : > { %p244_p13 = scmp.gt.s32.totalorder (!%p205_p10), %s792_s16, 0  ;;  %p259_p0 = scmp.gt.s32.totalorder (!%p205_p10), %s1035_s21, 0 }
  0x17   : > { %s1053_s9 = smov (!%p205_p10), 112   ;;  %s246_s28 = sadd.s32 (!%p205_p10), 128, %s790_s12 }
  0x18   : > { %p247_p1 = scmp.lt.s32.totalorder (!%p205_p10), %s246_s28, 128  ;;  %p264_p2 = scmp.lt.s32.totalorder (!%p205_p10), %s1035_s21, 1 }
  0x19   : > { %s233_s14 = scalar_select %p232_p12, %s1039_s22, 1  ;;  %v330_v9 = vld [vmem:[%s1313_s3 + $0x10] sm:$0xff]  ;;  %vm332_vm2 = vcmask 72704   ;;  %v328_v10 = vld [vmem:[%s1313_s3] sm:$0xff]  ;;  %vm277_vm3 = vcmask 130048   ;;  %vm286_vm4 = vcmask 916480  }
  0x1a   : > { %s1339_s16 = smov (!%p244_p13, %s792_s16), 0  ;;  %s1341_s28 = smov (!%p247_p1, %s246_s28), 128  ;;  %851 = vmatprep.mubr.msk.f32.mxu1 %vm332_vm2, %v330_v9  ;;  %848 = vmatprep.mubr.msk.f32.mxu0 %vm332_vm2, %v328_v10  ;;  %vm293_vm5 = vcmask 1042432   ;;  %vm295_vm6 = vcmask 1045504   ;;  %v1057_v19 = vmov 0   ;;  %v642_v20 = vld [vmem:[%s1314_s4] sm:$0xff] }
  0x1b   : > { %s825_s17 = sshll.u32 %s233_s14, 3  ;;  %s249_s29 = sshra.s32 %s1339_s16, 7  ;;  %957 = vset.pattern.permute.xlu0 %v1057_v19  ;;  %958 = vset.pattern.permute.xlu1 %v1057_v19  ;;  %v643_v21 = vld [vmem:[%s1314_s4 + $0x8] sm:$0xff]  ;;  %v645_v22 = vld [vmem:[%s1314_s4 + $0x18] sm:$0xff]  ;;  %v644_v23 = vld [vmem:[%s1314_s4 + $0x10] sm:$0xff]  ;;  %vm345_vm7 = vcmask 1040384  }
  0x1c   : > { %s236_s30 = scalar_lea.vmem %s1310_s0, %s825_s17  ;;  %s793_s24 = sshll.u32 %s249_s29, 2  ;;  %v795_v24 = vld [vmem:[%s1311_s1] ss:$0 sm:$0xff]  ;;  %v331_v31 = vld [vmem:[%s1313_s3 + $0x18] sm:$0xff]  ;;  %v329_v34 = vld [vmem:[%s1313_s3 + $0x8] sm:$0xff] }
  0x1d   : > { %s241_s8 = scalar_lea.vmem %s236_s30, %s791_s15  ;;  %s252_s13 = scalar_lea.vmem %s236_s30, %s793_s24  ;;  %v796_v29 = vld [vmem:[%s1312_s2] ss:$0 sm:$0xff]  ;;  %v798_v37 = vld [vmem:[%s1313_s3 + $0x28] sm:$0xff]  ;;  %v799_v39 = vld [vmem:[%s1313_s3 + $0x30] sm:$0xff] }
  0x1e   : > { %v242_v0 = vld [vmem:[%s241_s8] sm:$0x7]  ;;  %s260_s10 = scalar_select %p259_p0, 1, 0  ;;  %v812_v40 = vld [vmem:[%s1313_s3 + $0x48] sm:$0xff]  ;;  %v813_v41 = vld [vmem:[%s1313_s3 + $0x50] sm:$0xff] }
  0x1f   : > { %279 = vrot.lane.b32.xlu0 %v242_v0, %s1053_s9  ;;  %v253_v2 = vld [vmem:[%s252_s13] sm:$0x7]  ;;  %s265_s14 = scalar_select %p264_p2, 1, 0  ;;  %v288_v11 = vrot.slane %v242_v0, 5  ;;  %v800_v42 = vld [vmem:[%s1313_s3 + $0x38] sm:$0xff] }
  0x20   : > { %v261_v1 = vstv %s260_s10  ;;  %s1054_s17 = smov 16   ;;  %s254_s15 = sshra.s32 %s1341_s28, 7  ;;  %v797_v36 = vld [vmem:[%s1313_s3 + $0x20] sm:$0xff]  ;;  %v814_v43 = vld [vmem:[%s1313_s3 + $0x58] sm:$0xff] }
  0x21   : > { %vm262_vm0 = vcmp.eq.s32.totalorder %v261_v1, 1  ;;  %s794_s26 = sshll.u32 %s254_s15, 2  ;;  %v266_v4 = vstv %s265_s14  ;;  %s1055_s28 = smov 1   ;;  %v811_v38 = vld [vmem:[%s1313_s3 + $0x40] sm:$0xff] }
  0x22   : > { %v263_v3 = vsel %vm262_vm0, %v253_v2, 0.0  ;;  %s257_s27 = scalar_lea.vmem %s236_s30, %s794_s26  ;;  %vm267_vm1 = vcmp.eq.s32.totalorder %v266_v4, 1  ;;  %s1056_s30 = smov 127  }
  0x23   : > { %270 = vrot.lane.b32.xlu1 %v263_v3, %s1054_s17  ;;  %v258_v5 = vld [vmem:[%s257_s27] sm:$0x7]  ;;  %s229_s10 = sand.u32 1, %s1027_s19   ;;  %s821_s14 = sshll.u32 %s1039_s22, 3 }
  0x24   : > { %v268_v6 = vsel %vm267_vm1, %v258_v5, 0.0  ;;  %s787_s13 = sshll.u32 %s229_s10, 5  ;;  %s1259_s29 = scalar_lea.sflag [#allocation3], %s229_s10 }
  0x25   : > { %283 = vrot.lane.b32.xlu0 %v268_v6, %s1053_s9  ;;  %s231_s15 = scalar_lea.vmem [#allocation2], %s787_s13  ;;  %s1058_s16 = smov [#allocation2]  }
  0x26   : > { %s701_s26 = sshll.u32 %s231_s15, 4  ;;  %s1250_s26 = int_to_ptr.vmem [resolvable:$true] %s701_s26 }
  0x27   : > { %274 = vrot.lane.b32.xlu1 %v242_v0, %s1054_s17  ;;  %s698_s17 = sadd.s32 %s1035_s21, %s821_s14  ;;  %s959_s12 = scalar_lea.vmem %s1250_s26, 512 }
  0x28   : > { %s822_s22 = sshll.u32 %s698_s17, 7  ;;  %p960_p4 = scmp.ne.s32.totalorder %s1250_s26, %s959_s12 }
  0x29   : > { %s1255_s24 = scalar_lea.hbm %s1315_s5, %s822_s22 }
  0x2a   : > { %p961_p5 = pnand %p960_p4, %p1143_p3 }
  0x2c   : > { %p962_p6 = pneg %p961_p5 }
  0x91   : > { %v280_v7 = vpop.permute.xlu0 %279 }
  0x95   : > { %v271_v8 = vpop.permute.xlu1 %270 }
  0x97   : > { %v284_v13 = vpop.permute.xlu0 %283 }
  0x98   : > { %v287_v15 = vsel %vm286_vm4, %v280_v7, %v284_v13 }
  0x99   : > { %v275_v12 = vpop.permute.xlu1 %274  ;;  %v291_v17 = vrot.slane %v287_v15, 2 }
  0x9a   : > { %v278_v14 = vsel %vm277_vm3, %v271_v8, %v275_v12 }
  0x9b   : > { %v294_v16 = vsel %vm293_vm5, %v278_v14, %v288_v11  ;;  %299 = vrot.lane.b32.xlu0 %v291_v17, %s1055_s28 }
  0x9c   : > { %v296_v18 = vsel %vm295_vm6, %v294_v16, %v291_v17 }
  0x9d   : > { %297 = vrot.lane.b32.xlu1 %v296_v18, %s1055_s28  ;;  %s963_s28 = sshll.u32 %s1058_s16, 4  ;;  %s964_s28 = int_to_ptr.vmem [resolvable:$false] %s963_s28 }
  0x9e   : > { %p966_p7 = scmp.lt.s32.totalorder %s1250_s26, %s964_s28 }
  0x9f   : > { %312 = vrot.lane.b32.xlu0 %v291_v17, %s1056_s30 }
  0xa1   : > { %310 = vrot.lane.b32.xlu1 %v296_v18, %s1056_s30  ;;  %s965_s30 = scalar_lea.vmem %s964_s28, 1024 }
  0xa2   : > { %p967_p9 = scmp.lt.s32.totalorder %s965_s30, %s959_s12 }
  0xa3   : > { %648 = vperm.xlu0 %957, %v642_v20  }
  0xa4   : > { %p968_p10 = por %p967_p9, %p966_p7 }
  0xa5   : > { %653 = vperm.xlu1 %958, %v643_v21  }
  0xa6   : > { %p969_p11 = pnand %p968_p10, %p962_p6 }
  0xa7   : > { %663 = vperm.xlu0 %957, %v645_v22  }
  0xa9   : > { %658 = vperm.xlu1 %958, %v644_v23  }
 0x10d   : > { %v300_v25 = vpop.permute.xlu0 %299 }
 0x10e   : > { %v309_v26 = vmul.f32 %v795_v24, %v300_v25 }
 0x10f   : > { %v298_v27 = vpop.permute.xlu1 %297 }
 0x110   : > { %v308_v28 = vmul.f32 %v795_v24, %v298_v27  ;;  %844 = vmatprep.subr.msk.mxu0 %vm345_vm7, %v309_v26  ;;  %874 = vmatprep.subr.msk.mxu1 %vm345_vm7, %v309_v26 }
 0x111   : > { %845 = vmatpush3.msk.msra.mxu0 %vm345_vm7, %v309_v26  ;;  %876 = vmatpush3.msk.msra.mxu1 %vm345_vm7, %v309_v26  ;;  %v313_v30 = vpop.permute.xlu0 %312 }
 0x112   : > { %v322_v32 = vmul.f32 %v796_v29, %v313_v30  ;;  %846 = vmatprep.subr.mxu0 %v308_v28  ;;  %875 = vmatprep.subr.mxu1 %v308_v28 }
 0x113   : > { %v311_v33 = vpop.permute.xlu1 %310  ;;  %847 = vmatpush3.msra.mxu0 %v308_v28  ;;  %877 = vmatpush3.msra.mxu1 %v308_v28 }
 0x114   : > { %v321_v35 = vmul.f32 %v796_v29, %v311_v33  ;;  %852 = vmatmul.mubr.msk.f32.vlgmr.msra.gmra.mxu1 %vm332_vm2, %v331_v31  ;;  %854 = vmatprep.subr.msk.mxu1 %vm345_vm7, %v291_v17 }
 0x115   : > { %864 = vmatprep.subr.msk.mxu0 %vm345_vm7, %v322_v32  ;;  %849 = vmatmul.mubr.msk.f32.vlgmr.msra.gmra.mxu0 %vm332_vm2, %v329_v34 }
 0x116   : > { %855 = vmatpush3.msk.msra.mxu1 %vm345_vm7, %v291_v17  ;;  %865 = vmatpush3.msk.msra.mxu0 %vm345_vm7, %v322_v32 }
 0x117   : > { %856 = vmatprep.subr.mxu1 %v296_v18  ;;  %866 = vmatprep.subr.mxu0 %v321_v35 }
 0x118   : > { %857 = vmatpush3.msra.mxu1 %v296_v18  ;;  %858 = vmatprep.mubr.msk.f32.mxu1 %vm332_vm2, %v797_v36 }
 0x119   : > { %867 = vmatpush3.msra.mxu0 %v321_v35  ;;  %859 = vmatmul.mubr.msk.f32.vlgmr.msra.gmra.mxu1 %vm332_vm2, %v798_v37 }
 0x11a   : > { %868 = vmatprep.mubr.msk.f32.mxu0 %vm332_vm2, %v811_v38  ;;  %861 = vmatprep.mubr.msk.f32.mxu1 %vm332_vm2, %v799_v39 }
 0x11b   : > { %869 = vmatmul.mubr.msk.f32.vlgmr.msra.gmra.mxu0 %vm332_vm2, %v812_v40 }
 0x11c   : > { %871 = vmatprep.mubr.msk.f32.mxu0 %vm332_vm2, %v813_v41 }
 0x11d   : > { %862 = vmatmul.mubr.msk.f32.gmra.mxu1 %vm332_vm2, %v800_v42 }
 0x11e   : > { %v649_v50 = vpop.permute.xlu0 %648 }
 0x11f   : > { %872 = vmatmul.mubr.msk.f32.gmra.mxu0 %vm332_vm2, %v814_v43 }
 0x120   : > { %v654_v55 = vpop.permute.xlu1 %653 }
 0x122   : > { %v664_v3 = vpop.permute.xlu0 %663 }
 0x124   : > { %v659_v11 = vpop.permute.xlu1 %658 }
 0x1d4   : > { %v853_v44 = vpop.f32.mrf.mxu1 }
 0x1d5   : > { %v850_v45 = vpop.f32.mrf.mxu0 }
 0x1d6   : > { %v425_v46 = vpop.f32.mrf.mxu1 }
 0x1d7   : > { %v415_v47 = vpop.f32.mrf.mxu0 }
 0x1d9   : > { %v860_v48 = vpop.f32.mrf.mxu1 }
 0x1da   : > { %v520_v49 = vadd.f32 %v860_v48, %v850_v45 }
 0x1db   : > { %v870_v51 = vpop.f32.mrf.mxu0  ;;  %v514_v52 = vpop.f32.mrf.mxu1 }
 0x1dc   : > { %v639_v53 = vadd.f32 %v870_v51, %v520_v49  ;;  %v515_v54 = vadd.f32 %v514_v52, %v415_v47 }
 0x1dd   : > { %v619_v56 = vpop.f32.mrf.mxu0  ;;  %v863_v57 = vpop.f32.mrf.mxu1 }
 0x1de   : > { %v638_v58 = vadd.f32 %v619_v56, %v515_v54  ;;  %v667_v59 = vadd.f32 %v654_v55, %v639_v53  ;;  %v530_v60 = vadd.f32 %v863_v57, %v853_v44 }
 0x1df   : > { %v873_v61 = vpop.f32.mrf.mxu0  ;;  %v524_v62 = vpop.f32.mrf.mxu1 }
 0x1e0   : > { %v666_v63 = vadd.f32 %v649_v50, %v638_v58  ;;  %vm671_vm8 = vcmp.ge.f32.partialorder %v667_v59, 0.0  ;;  %v675_v0 = vmul.f32 0.01, %v667_v59  ;;  %v641_v1 = vadd.f32 %v873_v61, %v530_v60 }
 0x1e1   : > { %v525_v2 = vadd.f32 %v524_v62, %v425_v46  ;;  %v629_v7 = vpop.f32.mrf.mxu0 }
 0x1e2   : > { %vm670_vm9 = vcmp.ge.f32.partialorder %v666_v63, 0.0  ;;  %v674_v4 = vmul.f32 0.01, %v666_v63  ;;  %v679_v5 = vsel %vm671_vm8, %v667_v59, %v675_v0  ;;  %v669_v6 = vadd.f32 %v664_v3, %v641_v1 }
 0x1e3   : > { %683 = vst [vmem:[%s231_s15 + $0x8] sm:$0xff] %v679_v5  ;;  %v640_v8 = vadd.f32 %v629_v7, %v525_v2 }
 0x1e4   : > { %v678_v9 = vsel %vm670_vm9, %v666_v63, %v674_v4  ;;  %vm673_vm10 = vcmp.ge.f32.partialorder %v669_v6, 0.0  ;;  %v677_v10 = vmul.f32 0.01, %v669_v6 }
 0x1e5   : > { %682 = vst [vmem:[%s231_s15] sm:$0xff] %v678_v9  ;;  %v668_v12 = vadd.f32 %v659_v11, %v640_v8 }
 0x1e6   : > { %v681_v13 = vsel %vm673_vm10, %v669_v6, %v677_v10 }
 0x1e7   : > { %685 = vst [vmem:[%s231_s15 + $0x18] sm:$0xff] %v681_v13  ;;  %vm672_vm11 = vcmp.ge.f32.partialorder %v668_v12, 0.0  ;;  %v676_v14 = vmul.f32 0.01, %v668_v12 }
 0x1e9   : > { %v680_v15 = vsel %vm672_vm11, %v668_v12, %v676_v14 }
 0x1ea   : > { %684 = vst [vmem:[%s231_s15 + $0x10] sm:$0xff] %v680_v15 }
 0x1eb   : > { %972 = shalt.err (!%p969_p11)
}
 0x1ec   : > { %s973_s8 = scalar_lea.hbm %s1255_s24, 512  ;;  %s977_s13 = scalar_lea.hbm %s1315_s5, 2048 }
 0x1ed   : > { %p974_p12 = scmp.ne.s32.totalorder %s1255_s24, %s973_s8  ;;  %p978_p1 = scmp.lt.s32.totalorder %s1255_s24, %s1315_s5 }
 0x1ee   : > { %p979_p2 = scmp.lt.s32.totalorder %s977_s13, %s973_s8 }
 0x1ef   : > { %p975_p13 = pnand %p974_p12, %p1143_p3 }
 0x1f0   : > { %p980_p4 = por %p979_p2, %p978_p1 }
 0x1f1   : > { %p976_p0 = pneg %p975_p13 }
 0x1f3   : > { %p981_p5 = pnand %p980_p4, %p976_p0 }
 0x1f5   : > { %984 = shalt.err (!%p981_p5)
}
 0x1f6   : > { %s1059_s15 = smov 128   ;;  %s1060_s22 = smov 256  }
 0x1f7   : > { %s1061_s21 = smov 8  }
 0x1f8   : > { %878 = dma.vmem_to_hbm [thread:$0]  (%p1143_p3), %s1250_s26, 512, %s1255_s24, %s1259_s29, %s1059_s15, %s1060_s22, %s1061_s21  }
 0x1f9 PF: > { %p884_p6 = scmp.ge.s32.totalorder %s1051_s25, 2  ;;  %s716_s27 = sand.u32 1, %s1023_s18  }
 0x1fa   : > { %s717_s12 = scalar_lea.sflag [#allocation3], %s716_s27 }
 0x1fb   : > { %p881_p7 = pnand %p884_p6, %p1152_p8 }
 0x1fd   : > { %p882_p9 = pneg %p881_p7 }
 0x1ff   : > { %1018 = dma.done.wait (%p882_p9), %s717_s12, 512  }
 0x200   : > { %1020 = vsyncadd (%p882_p9), %s717_s12, 4294966784  ;;  %s18_s25 = sadd.s32 1, %s1051_s25   ;;  %s1324_s22 = sld [smem:[#allocation5_spill]] }
 0x201   : > { %p15_p10 = scmp.ge.s32.totalorder %s18_s25, 6   ;;  %s1325_s6 = sld [smem:[#allocation6_spill]] }
 0x202   : > { %s1326_s24 = sld [smem:[#allocation7_spill]]  ;;  %s1327_s18 = smov %s1027_s19 }
 0x203   : > { %s1328_s19 = smov %s1031_s20  ;;  %s1329_s20 = smov %s1161_s11 }
 0x204   : > { %s1330_s21 = smov %s1043_s23  ;;  %17 = sbr.rel (!%p15_p10) target bundleno = 5 (0x5), region = 80 }
 0x207   : > { %s1331_s23 = smov %s1325_s6 }
 0x209   :  { %722 = vsyncpa [#allocation3], 1 }
 0x20a   :  { %724 = vsyncpa [#allocation3 + $0x1], 1 }

</bundles_post_ra>
